<compile_context>
chip_gen: v7x
topology: tpu7x:2x2x1
jax: 0.10.0
libtpu: 0.0.40
codegen_flags: <defaults>
</compile_context>

<pallas_src>
import jax
import jax.numpy as jnp
from jax import lax
from jax.experimental import pallas as pl
from jax.experimental.pallas import tpu as pltpu

# ---- shapes implied by Net.forward (x.view(-1, 12) must be exact) ----
N = 2                              # batch
C_IN = 3                           # conv1 input channels
K = 5                              # conv1 kernel size
H, W = 8, 10                       # spatial: (H-4) * ((W-4)//2) * 1 channel = 12 features
OH, OW = H - K + 1, W - K + 1      # 4, 6
OWP = OW // 2                      # 3 after MaxPool2d([1, 2])
CKK = C_IN * K * K                 # 75 conv taps
FC_IN, FC_OUT = 12, 3              # Linear(12, 3)
KDIM = FC_IN * CKK + 1             # 901: im2col features + constant-1 bias column


def net_kernel(p_ref, wblkT_ref, wfc_ref, bfc_ref, o_ref):
    """Fused conv1(+bias) -> ReLU -> MaxPool2d([1,2]) -> flatten -> fc1 -> ReLU.

    p_ref     : (2N, 901) im2col patches + a trailing constant-1 column. Rows
                [0, N) hold the EVEN conv output columns (ow = 2*jp), rows
                [N, 2N) the ODD ones, laid out in x.view(-1, 12) flatten order.
    wblkT_ref : (12, 901) lane-major block-diagonal conv weight with conv_b in
                the last column, so conv + bias is ONE MXU pass (A @ B.T).
    """
    n = o_ref.shape[0]
    # conv1 + bias for all (even, odd) pooled column candidates in ONE MXU pass.
    conv = lax.dot_general(
        p_ref[...], wblkT_ref[...],
        dimension_numbers=(((1,), (1,)), ((), ())),
        preferred_element_type=jnp.float32)              # (2N, 12)
    conv = jnp.maximum(conv, 0.0)                        # ReLU(conv1)
    # MaxPool2d([1, 2]): pure VPU elementwise max of the even/odd halves.
    pooled = jnp.maximum(conv[:n, :], conv[n:, :])       # (N, 12) == x.view(-1, 12)
    # fc1 (12 -> 3) as one small dot + bias, then the final ReLU.
    fc = jnp.dot(pooled, wfc_ref[...], preferred_element_type=jnp.float32) + bfc_ref[...]
    o_ref[...] = jnp.maximum(fc, 0.0)                    # (N, 3); tiny masked store is OK


def prepare_params(conv_w, conv_b, fc_w, fc_b):
    """One-time, init-side parameter prep (hoisted out of the per-call forward)."""
    # Row f of w_blk_t carries the 75 conv taps at columns [f*75, (f+1)*75) and
    # conv_b at column 900, matching the patch layout produced in net_forward.
    w_row = conv_w.reshape(1, CKK).astype(jnp.float32)                # c*25 + kh*5 + kw
    w_blk_t = jnp.kron(jnp.eye(FC_IN, dtype=jnp.float32), w_row)      # (12, 900)
    bias_col = jnp.full((FC_IN, 1), conv_b.reshape(())).astype(jnp.float32)
    w_blk_t = jnp.concatenate([w_blk_t, bias_col], axis=1)            # (12, 901)
    wfc_t = fc_w.T.astype(jnp.float32)                                # (12, 3)
    bfc = fc_b.reshape(1, FC_OUT).astype(jnp.float32)                 # (1, 3)
    return w_blk_t, wfc_t, bfc


@jax.jit
def net_forward(x, w_blk_t, wfc_t, bfc):
    n = x.shape[0]
    # im2col (XLA side): wins[n, oh, ow, c*K*K + kh*K + kw] = x[n, c, oh+kh, ow+kw]
    wins = jnp.stack([x[:, :, kh:kh + OH, kw:kw + OW]
                      for kh in range(K) for kw in range(K)], axis=-1)    # (N, C, OH, OW, K*K)
    wins = wins.transpose(0, 2, 3, 1, 4).reshape(n, OH, OW, CKK)
    # Split even / odd conv output columns so MaxPool2d([1,2]) becomes an elementwise
    # maximum inside the kernel; lane order is (oh-major, owp-minor) == x.view(-1, 12).
    p_even = wins[:, :, 0::2, :].reshape(n, FC_IN * CKK)
    p_odd = wins[:, :, 1::2, :].reshape(n, FC_IN * CKK)
    ones = jnp.ones((2 * n, 1), jnp.float32)                              # bias column
    patches = jnp.concatenate(
        [jnp.concatenate([p_even, p_odd], axis=0), ones], axis=1)         # (2N, 901)

    return pl.pallas_call(
        net_kernel,
        out_shape=jax.ShapeDtypeStruct((n, FC_OUT), jnp.float32),
        in_specs=[
            pl.BlockSpec(memory_space=pltpu.MemorySpace.VMEM),   # patches (2N, 901)
            pl.BlockSpec(memory_space=pltpu.MemorySpace.VMEM),   # conv weight (12, 901)
            pl.BlockSpec(memory_space=pltpu.MemorySpace.VMEM),   # fc weight (12, 3)
            pl.BlockSpec(memory_space=pltpu.MemorySpace.VMEM),   # fc bias (1, 3)
        ],
        out_specs=pl.BlockSpec(memory_space=pltpu.MemorySpace.VMEM),
    )(patches, w_blk_t, wfc_t, bfc)


def reference(x, conv_w, conv_b, fc_w, fc_b):
    """Pure-JAX reference of the PyTorch forward."""
    co = lax.conv_general_dilated(
        x, conv_w, (1, 1), "VALID", dimension_numbers=("NCHW", "OIHW", "NCHW"))
    co = jnp.maximum(co + conv_b.reshape(1, -1, 1, 1), 0.0)    # relu(conv1(x))
    mp = jnp.maximum(co[..., 0::2], co[..., 1::2])             # MaxPool2d([1, 2])
    flat = mp.reshape(-1, FC_IN)                               # x.view(-1, 12)
    return jnp.maximum(flat @ fc_w.T + fc_b, 0.0)              # relu(fc1(x))


if __name__ == "__main__":
    key = jax.random.PRNGKey(0)
    kx, k1, k2, k3, k4 = jax.random.split(key, 5)

    x = jax.random.normal(kx, (N, C_IN, H, W), jnp.float32)

    # deterministic parameter init (kaiming-uniform-ish, like nn.Conv2d / nn.Linear)
    fan1 = C_IN * K * K
    conv_w = jax.random.uniform(k1, (1, C_IN, K, K), jnp.float32, -1.0, 1.0) / jnp.sqrt(fan1)
    conv_b = jax.random.uniform(k2, (1,), jnp.float32, -1.0, 1.0) / jnp.sqrt(fan1)
    fc_w = jax.random.uniform(k3, (FC_OUT, FC_IN), jnp.float32, -1.0, 1.0) / jnp.sqrt(FC_IN)
    fc_b = jax.random.uniform(k4, (FC_OUT,), jnp.float32, -1.0, 1.0) / jnp.sqrt(FC_IN)

    # One-time, init-side parameter preparation (hoisted out of the jitted forward).
    w_blk_t, wfc_t, bfc = prepare_params(conv_w, conv_b, fc_w, fc_b)
    w_blk_t, wfc_t, bfc = jax.block_until_ready((w_blk_t, wfc_t, bfc))

    out = jax.block_until_ready(net_forward(x, w_blk_t, wfc_t, bfc))
    ref = reference(x, conv_w, conv_b, fc_w, fc_b)

    assert out.shape == (N, FC_OUT), out.shape
    assert jnp.allclose(out, ref, atol=1e-5, rtol=1e-5), (out, ref)
    print("KERNEL_OK")
</pallas_src>

<mosaic_0001>
module attributes {stable_mosaic.version = 11 : i64} {
  func.func @net_kernel(%arg0: memref<4x901xf32, #tpu.memory_space<vmem>>, %arg1: memref<12x901xf32, #tpu.memory_space<vmem>>, %arg2: memref<12x3xf32, #tpu.memory_space<vmem>>, %arg3: memref<1x3xf32, #tpu.memory_space<vmem>>, %arg4: memref<2x3xf32, #tpu.memory_space<vmem>>) attributes {dimension_semantics = [], scalar_prefetch = 0 : i64, scratch_operands = 0 : i64, tpu.core_type = #tpu.core_type<tc>} {
    %c0 = arith.constant 0 : index
    %c0_0 = arith.constant 0 : index
    %0 = vector.load %arg0[%c0, %c0_0] : memref<4x901xf32, #tpu.memory_space<vmem>>, vector<4x901xf32>
    %c0_1 = arith.constant 0 : index
    %c0_2 = arith.constant 0 : index
    %1 = vector.load %arg1[%c0_1, %c0_2] : memref<12x901xf32, #tpu.memory_space<vmem>>, vector<12x901xf32>
    %cst = arith.constant dense<0.000000e+00> : vector<4x12xf32>
    %2 = tpu.matmul %0, %1, %cst {dimension_numbers = #tpu.dot_dimension_numbers<[1], [1], [0], [0], [0, 0, 1, 0], [], []>} : vector<4x901xf32>, vector<12x901xf32>, vector<4x12xf32> -> vector<4x12xf32>
    %cst_3 = arith.constant 0.000000e+00 : f32
    %3 = vector.broadcast %cst_3 : f32 to vector<4x12xf32>
    %4 = arith.maximumf %2, %3 : vector<4x12xf32>
    %5 = vector.extract_strided_slice %4 {offsets = [0, 0], sizes = [2, 12], strides = [1, 1]} : vector<4x12xf32> to vector<2x12xf32>
    %6 = vector.extract_strided_slice %4 {offsets = [2, 0], sizes = [2, 12], strides = [1, 1]} : vector<4x12xf32> to vector<2x12xf32>
    %7 = arith.maximumf %5, %6 : vector<2x12xf32>
    %c0_4 = arith.constant 0 : index
    %c0_5 = arith.constant 0 : index
    %8 = vector.load %arg2[%c0_4, %c0_5] : memref<12x3xf32, #tpu.memory_space<vmem>>, vector<12x3xf32>
    %cst_6 = arith.constant dense<0.000000e+00> : vector<2x3xf32>
    %9 = tpu.matmul %7, %8, %cst_6 {dimension_numbers = #tpu.dot_dimension_numbers<[1], [0], [0], [1], [0, 0, 1, 1], [], []>} : vector<2x12xf32>, vector<12x3xf32>, vector<2x3xf32> -> vector<2x3xf32>
    %c0_7 = arith.constant 0 : index
    %c0_8 = arith.constant 0 : index
    %10 = vector.load %arg3[%c0_7, %c0_8] : memref<1x3xf32, #tpu.memory_space<vmem>>, vector<1x3xf32>
    %11 = vector.broadcast %10 : vector<1x3xf32> to vector<2x3xf32>
    %12 = arith.addf %9, %11 : vector<2x3xf32>
    %cst_9 = arith.constant 0.000000e+00 : f32
    %13 = vector.broadcast %cst_9 : f32 to vector<2x3xf32>
    %14 = arith.maximumf %12, %13 : vector<2x3xf32>
    %c0_10 = arith.constant 0 : index
    %c0_11 = arith.constant 0 : index
    %15 = vector.load %arg4[%c0_10, %c0_11] : memref<2x3xf32, #tpu.memory_space<vmem>>, vector<2x3xf32>
    tpu.vector_store %arg4[%c0_10, %c0_11], %14 {strides = array<i32>} : memref<2x3xf32, #tpu.memory_space<vmem>>, vector<2x3xf32>,
    return
  }
}

</mosaic_0001>

<bundles_post_ra>
// kernel: net_forward.1
= control target key start
LH: loop header
LB: loop body
LE: loop exit
PB: predicated region body
PF: predicated region fallthrough
CT: control target
= control target key end

     0   :  { %vm49_vm0 = vcmask 39936   ;;  %s636_s0 = inlined_call_operand.vmem [shape: f32[4,901], index: 0, kind: input, shape index: {}]   ;;  %s637_s1 = inlined_call_operand.vmem [shape: f32[12,901], index: 1, kind: input, shape index: {}]   ;;  %s638_s2 = inlined_call_operand.vmem [shape: f32[12,3], index: 2, kind: input, shape index: {}]   ;;  %s639_s3 = inlined_call_operand.vmem [shape: f32[1,3], index: 3, kind: input, shape index: {}]   ;;  %s640_s4 = inlined_call_operand.hbm [shape: f32[2,3], index: 4, kind: output, shape index: {}]  }
   0x1   :  { %v23_v0 = vld [vmem:[%s637_s1 + $0x8] sm:$0xff]  ;;  %v22_v5 = vld [vmem:[%s637_s1] sm:$0xff]  ;;  %v20_v14 = vld [vmem:[%s636_s0 + $0x10] sm:$0xff] }
   0x2   :  { %v31_v1 = vld [vmem:[%s637_s1 + $0x48] sm:$0xf]  ;;  %v30_v6 = vld [vmem:[%s637_s1 + $0x40] sm:$0xf]  ;;  %v25_v15 = vld [vmem:[%s637_s1 + $0x18] sm:$0xff]  ;;  %v44_v17 = vcombine.high %v20_v14, %v20_v14 }
   0x3   :  { %v27_v2 = vld [vmem:[%s637_s1 + $0x28] sm:$0xff]  ;;  %v463_v3 = vpack.c.bf16 %v31_v1, %v23_v0  ;;  %v465_v8 = vpack.c.bf16 %v30_v6, %v22_v5  ;;  %v26_v9 = vld [vmem:[%s637_s1 + $0x20] sm:$0xff]  ;;  %v33_v16 = vld [vmem:[%s637_s1 + $0x58] sm:$0xf] }
   0x4   :  { %v35_v4 = vld [vmem:[%s637_s1 + $0x68] sm:$0xf]  ;;  %v34_v10 = vld [vmem:[%s637_s1 + $0x60] sm:$0xf]  ;;  %v467_v18 = vpack.c.bf16 %v33_v16, %v25_v15  ;;  %v29_v19 = vld [vmem:[%s637_s1 + $0x38] sm:$0xff]  ;;  %262 = vmatprep.mubr.f32.mxu0 %v44_v17 }
   0x5   :  { %v471_v7 = vpack.c.bf16 %v35_v4, %v27_v2  ;;  %v18_v11 = vld [vmem:[%s636_s0] sm:$0xff]  ;;  %464 = vmatprep.subr.bf16.mxu1 %v463_v3  ;;  %v473_v12 = vpack.c.bf16 %v34_v10, %v26_v9  ;;  %v37_v20 = vld [vmem:[%s637_s1 + $0x78] sm:$0xf]  ;;  %vm476_vm1 = vmpackc.low %vm49_vm0, %vm49_vm0 }
   0x6   :  { %v42_v13 = vcombine.high %v18_v11, %v18_v11  ;;  %466 = vmatpush1.bf16.xpose.msra.mxu1 %v465_v8  ;;  %v475_v21 = vpack.c.bf16 %v37_v20, %v29_v19  ;;  %v24_v22 = vld [vmem:[%s637_s1 + $0x10] sm:$0xff]  ;;  %v19_v26 = vld [vmem:[%s636_s0 + $0x8] sm:$0xff]  ;;  %v21_v27 = vld [vmem:[%s636_s0 + $0x18] sm:$0xff] }
   0x7   :  { %472 = vmatprep.subr.bf16.mxu0 %v471_v7  ;;  %v32_v23 = vld [vmem:[%s637_s1 + $0x50] sm:$0xf]  ;;  %468 = vmatprep.subr.bf16.mxu1 %v467_v18 }
   0x8   :  { %474 = vmatpush1.bf16.xpose.msra.mxu0 %v473_v12  ;;  %122 = vmatprep.mubr.f32.mxu1 %v42_v13  ;;  %v28_v24 = vld [vmem:[%s637_s1 + $0x30] sm:$0xff] }
   0x9   :  { %v36_v25 = vld [vmem:[%s637_s1 + $0x70] sm:$0xf]  ;;  %477 = vmatprep.subr.msk.bf16.mxu0 %vm476_vm1, %v475_v21 }
   0xa   :  { %9 = vsyncpa [#allocation3], 0  ;;  %v469_v28 = vpack.c.bf16 %v32_v23, %v24_v22  ;;  %v478_v29 = vpack.c.bf16 %v36_v25, %v28_v24  ;;  %v43_v30 = vcombine.high %v19_v26, %v19_v26  ;;  %v45_v31 = vcombine.high %v21_v27, %v21_v27  ;;  %v343_v32 = vld [vmem:[%s638_s2] sm:$0xff]  ;;  %v344_v33 = vld [vmem:[%s638_s2 + $0x8] sm:$0xf]  ;;  %s526_s6 = smov [#allocation2]  }
   0xb   :  { %vm356_vm2 = vcmask 1043456   ;;  %v481_v34 = vpack.c.bf16 %v344_v33, %v343_v32  ;;  %v522_v35 = vmov 0.0|0.0   ;;  %vm523_vm3 = vmmov 1   ;;  %v450_v45 = vld [vmem:[%s639_s3] ss:$0 sm:$0xff]  ;;  %s439_s7 = sshll.u32 %s526_s6, 4  ;;  %s440_s7 = int_to_ptr.vmem [resolvable:$true] %s439_s7 }
   0xc   :  { %vm482_vm4 = vmpackc.low %vm356_vm2, %vm523_vm3  ;;  %vm524_vm5 = vmmov 0   ;;  %v525_v36 = vmov 0.0   ;;  %vm352_vm6 = vcmask 97280   ;;  %vm431_vm7 = vcmask 17408   ;;  %s498_s8 = scalar_lea.vmem %s440_s7, 32  ;;  %p503_p1 = scmp.lt.s32.totalorder %s440_s7, %s440_s7 }
   0xd   :  { %123 = vmatmul.mubr.f32.vlgmr.msra.gmra.mrb[0].mxu1 %v18_v11  ;;  %p499_p0 = scmp.ne.s32.totalorder %s440_s7, %s498_s8  ;;  %p504_p2 = scmp.lt.s32.totalorder %s498_s8, %s498_s8 }
   0xe   :  { %470 = vmatpush1.bf16.xpose.msra.mxu1 %v469_v28  ;;  %192 = vmatprep.mubr.f32.mxu1 %v43_v30 }
   0xf   :  { %263 = vmatmul.mubr.f32.vlgmr.msra.gmra.mrb[0].mxu0 %v20_v14  ;;  %480 = vmatprep.subr.bf16.mxu1 %v522_v35  ;;  %p505_p3 = por %p504_p2, %p503_p1 }
  0x10   :  { %479 = vmatpush1.bf16.xpose.msra.mxu0 %v478_v29  ;;  %449 = vmatprep.mubr.msk.f32.mxu0 %vm49_vm0, %v45_v31 }
  0x11   :  { %p506_p4 = pnand %p505_p3, %p499_p0 }
  0x15   :  { %193 = vmatmul.mubr.f32.vlgmr.msra.gmra.mrb[0].mxu1 %v19_v26 }
  0x16   :  { %483 = vmatpush3.bf16.msk.msra.mxu1 %vm482_vm4, %v481_v34  ;;  %460 = vmatprep.mubr.msk.f32.mxu1 %vm524_vm5, %v525_v36 }
  0x17   :  { %333 = vmatmul.mubr.f32.vlgmr.msra.gmra.mrb[0].mxu0 %v21_v27 }
  0xe8   :  { %v194_v37 = vpop.f32.mrb[0].mxu1 }
  0xe9   :  { %v196_v39 = vpop.f32.mrb[1].mxu1 }
  0xea   :  { %v334_v38 = vpop.f32.mrb[0].mxu0 }
  0xeb   :  { %v484_v40 = vadd.f32 %v334_v38, %v194_v37  ;;  %v336_v41 = vpop.f32.mrb[1].mxu0 }
  0xed   :  { %v338_v42 = vmax.f32 %v484_v40, 0.0 }
  0xef   :  { %v340_v43 = vrot.slane %v338_v42, 2 }
  0xf1   :  { %v342_v44 = vmax.f32 %v338_v42, %v340_v43 }
  0xf3   :  { %461 = vmatmul.mubr.msk.f32.vlgmr.msra.gmra.mrb[2].mxu1 %vm352_vm6, %v342_v44 }
 0x1c6   :  { %v426_v46 = vpop.f32.mrb[2].mxu1 }
 0x1c7   :  { %v427_v47 = vadd.f32 %v450_v45, %v426_v46  ;;  %v462_v48 = vpop.f32.mrb[3].mxu1 }
 0x1c9   :  { %v430_v49 = vmax.f32 %v427_v47, 0.0 }
 0x1cb   :  { %432 = vst.msk [vmem:[#allocation2] sm:$0x3] %vm431_vm7, %v430_v49 }
 0x1cc   :  { %509 = shalt.err (!%p506_p4)
}
 0x1cd   :  { %s510_s3 = scalar_lea.hbm %s640_s4, 32 }
 0x1ce   :  { %p511_p5 = scmp.ne.s32.totalorder %s640_s4, %s510_s3  ;;  %p514_p6 = scmp.lt.u32.totalorder %s510_s3, %s640_s4 }
 0x1d0   :  { %p516_p7 = pnand %p514_p6, %p511_p5 }
 0x1d2   :  { %519 = shalt.err (!%p516_p7)
}
 0x1d3   :  { %442 = dma.vmem_to_hbm [thread:$0]  %s440_s7, 32, %s640_s4, [#allocation3]  }
 0x1d4   :  { %520 = dma.done.wait [#allocation3], 32  }
 0x1d5   :  { %521 = vsyncadd [#allocation3], 4294967264 }
 0x1d6   :  { %446 = vsyncpa [#allocation3], 1 }

</bundles_post_ra>
